<compile_context>
chip_gen: v7x
topology: tpu7x:2x2x1
jax: 0.10.0
libtpu: 0.0.40
codegen_flags: <defaults>
</compile_context>

<pallas_src>
import jax
import jax.numpy as jnp
from jax.experimental import pallas as pl
from jax.experimental.pallas import tpu as pltpu

EPS = 1e-5  # PyTorch BatchNorm2d default


def _conv_stats_kernel(x_ref, w_ref, y_ref, stats_ref):
    """Per-image 3x3 conv as one banded MXU matmul + per-lane BN partials.

    x_ref:     (1, H, W*Cin)      input row slab (f32 or bf16)
    w_ref:     (3*W*Cin, W*Cout)  banded weight slab, vertical taps along K
    y_ref:     (1, H, W*Cout)     conv output rows, f32
    stats_ref: (1, 2, W*Cout)     per-lane [sum, sum of squares], f32
    """
    x = x_ref[0]                                             # (H, W*Cin)
    zero_row = jnp.zeros((1, x.shape[1]), x.dtype)
    x_up = jnp.concatenate([zero_row, x[:-1, :]], axis=0)    # row r -> x[r-1]
    x_dn = jnp.concatenate([x[1:, :], zero_row], axis=0)     # row r -> x[r+1]
    # Stack the three vertical taps along K: one well-filled MXU pass/image.
    xcat = jnp.concatenate([x_up, x, x_dn], axis=-1)         # (H, 3*W*Cin)
    acc = jnp.dot(xcat, w_ref[...], preferred_element_type=jnp.float32)
    y_ref[0] = acc                                           # dense lane store

    # Per-lane partial stats (lane = ow*Cout + co); the cross-image and
    # cross-W-group combine happens outside the kernel on tiny data.
    s = jnp.sum(acc, axis=0, keepdims=True)                  # (1, W*Cout)
    ss = jnp.sum(acc * acc, axis=0, keepdims=True)           # (1, W*Cout)
    stats_ref[0] = jnp.concatenate([s, ss], axis=0)          # (2, W*Cout)


def _bn_relu_kernel(y_ref, scale_ref, shift_ref, o_ref):
    """Apply the already-reduced BN affine + ReLU: one dense VPU sweep."""
    o_ref[0] = jnp.maximum(y_ref[0] * scale_ref[...] + shift_ref[...], 0.0)


def _conv_bn_relu_impl(x_nchw, w_oihw, gamma, beta, *, compute_dtype=jnp.float32):
    """x_nchw: (N,Cin,H,W); w_oihw: (Cout,Cin,3,3); gamma/beta: (Cout,)."""
    n, cin, h, w = x_nchw.shape
    cout = w_oihw.shape[0]
    assert w_oihw.shape == (cout, cin, 3, 3)
    wcin, wco = w * cin, w * cout
    itemsize = jnp.dtype(compute_dtype).itemsize

    # Lane-dense row slabs (N, H, W*Cin).
    # TODO(synk): keep activations in this row-slab layout across layers so the
    # NCHW<->row-slab transposes stop costing an extra HBM pass per layer.
    x_rows = jnp.transpose(x_nchw, (0, 2, 3, 1)).reshape(n, h, wcin)
    x_rows = x_rows.astype(compute_dtype)

    # Banded weight slab: slab[dy, wi*Cin+ci, ow*Cout+co] = w[dy, wi-ow+1, ci, co]
    # when 0 <= wi-ow+1 <= 2, else 0 (folds horizontal taps + width zero-pad).
    # The three vertical taps are then stacked along K for the single matmul.
    w_hwio = jnp.transpose(w_oihw, (2, 3, 1, 0)).astype(jnp.float32)  # (3,3,Cin,Cout)
    wi = jnp.arange(w)[:, None, None]
    ow = jnp.arange(w)[None, :, None]
    dx = jnp.arange(3)[None, None, :]
    sel = (wi == ow + dx - 1).astype(jnp.float32)                     # (W, W, 3)
    slab = jnp.einsum("wox,yxic->ywioc", sel, w_hwio)
    slab = slab.reshape(3 * wcin, wco).astype(compute_dtype)

    # Scoped-VMEM limit: raises v5e's 16 MiB default, within v7x's 64 MiB.
    vmem_limit = 32 * 1024 * 1024

    # ---- pass 1: conv rows + per-image BN partials (gridded over batch). ----
    conv_flops = 2 * n * h * (3 * wcin) * wco
    conv_bytes = (n * h * wcin * itemsize + 3 * wcin * wco * itemsize
                  + n * h * wco * 4 + n * 2 * wco * 4)
    y_rows, stats = pl.pallas_call(
        _conv_stats_kernel,
        grid=(n,),
        in_specs=[
            pl.BlockSpec((1, h, wcin), lambda i: (i, 0, 0)),
            pl.BlockSpec((3 * wcin, wco), lambda i: (0, 0)),   # resident slab
        ],
        out_specs=(
            pl.BlockSpec((1, h, wco), lambda i: (i, 0, 0)),
            pl.BlockSpec((1, 2, wco), lambda i: (i, 0, 0)),
        ),
        out_shape=(
            jax.ShapeDtypeStruct((n, h, wco), jnp.float32),
            jax.ShapeDtypeStruct((n, 2, wco), jnp.float32),
        ),
        compiler_params=pltpu.CompilerParams(
            dimension_semantics=("parallel",),
            vmem_limit_bytes=vmem_limit),
        cost_estimate=pl.CostEstimate(flops=conv_flops, transcendentals=0,
                                      bytes_accessed=conv_bytes),
    )(x_rows, slab)

    # ---- BN finalize on tiny partials: (N, 2, W*Cout) -> per-channel. ----
    tot = stats.reshape(n, 2, w, cout).sum(axis=(0, 2))        # (2, Cout)
    cnt = float(n * h * w)
    mean = tot[0] / cnt
    # NOTE: single-pass E[x^2]-mean^2 is fine at 1e-4 for these activations;
    # switch to a shifted/Welford combine if activations acquire large means.
    var = tot[1] / cnt - mean * mean
    inv_std = jax.lax.rsqrt(var + EPS)
    scale_c = inv_std * gamma.astype(jnp.float32)
    shift_c = beta.astype(jnp.float32) - mean * scale_c
    scale_t = jnp.tile(scale_c, w).reshape(1, wco)             # lane-tiled
    shift_t = jnp.tile(shift_c, w).reshape(1, wco)

    # ---- pass 2: y = max(conv*scale + shift, 0), gridded over batch. ----
    bn_bytes = 2 * n * h * wco * 4 + 2 * wco * 4
    out_rows = pl.pallas_call(
        _bn_relu_kernel,
        grid=(n,),
        in_specs=[
            pl.BlockSpec((1, h, wco), lambda i: (i, 0, 0)),
            pl.BlockSpec((1, wco), lambda i: (0, 0)),
            pl.BlockSpec((1, wco), lambda i: (0, 0)),
        ],
        out_specs=pl.BlockSpec((1, h, wco), lambda i: (i, 0, 0)),
        out_shape=jax.ShapeDtypeStruct((n, h, wco), jnp.float32),
        compiler_params=pltpu.CompilerParams(
            dimension_semantics=("parallel",),
            vmem_limit_bytes=vmem_limit),
        cost_estimate=pl.CostEstimate(flops=2 * n * h * wco, transcendentals=0,
                                      bytes_accessed=bn_bytes),
    )(y_rows, scale_t, shift_t)

    # (N, H, W*Cout) -> NCHW to match the PyTorch module's output convention.
    return jnp.transpose(out_rows.reshape(n, h, w, cout), (0, 3, 1, 2))


conv_bn_relu = jax.jit(_conv_bn_relu_impl, static_argnames=("compute_dtype",))


def _reference(x_nchw, w_oihw, gamma, beta):
    """Pure-JAX reference mirroring the PyTorch forward (train-mode BN)."""
    conv = jax.lax.conv_general_dilated(
        x_nchw.astype(jnp.float32), w_oihw.astype(jnp.float32),
        window_strides=(1, 1), padding=((1, 1), (1, 1)),
        dimension_numbers=("NCHW", "OIHW", "NCHW"))
    mean = jnp.mean(conv, axis=(0, 2, 3), keepdims=True)
    var = jnp.mean((conv - mean) ** 2, axis=(0, 2, 3), keepdims=True)
    y = (conv - mean) * jax.lax.rsqrt(var + EPS)
    y = y * gamma.reshape(1, -1, 1, 1) + beta.reshape(1, -1, 1, 1)
    return jnp.maximum(y, 0.0)


if __name__ == "__main__":
    # Small deterministic problem: batch=2, Cin=4, Cout=8, 16x16 spatial.
    N, Cin, Cout, H, W = 2, 4, 8, 16, 16
    key = jax.random.PRNGKey(0)
    kx, kw, kg, kb = jax.random.split(key, 4)

    x = jax.random.normal(kx, (N, Cin, H, W), jnp.float32)
    wgt = jax.random.normal(kw, (Cout, Cin, 3, 3), jnp.float32) * 0.1
    gamma = 1.0 + 0.1 * jax.random.normal(kg, (Cout,), jnp.float32)
    beta = 0.1 * jax.random.normal(kb, (Cout,), jnp.float32)

    ref = _reference(x, wgt, gamma, beta)

    # Default f32 MXU path: strict 1e-4 check.
    out = jax.block_until_ready(conv_bn_relu(x, wgt, gamma, beta))
    assert out.shape == (N, Cout, H, W)
    assert jnp.allclose(out, ref, rtol=1e-4, atol=1e-4), (
        float(jnp.max(jnp.abs(out - ref))))

    # bf16 MXU fast path (v6e/v7x): bf16 matmul inputs, f32 accumulation.
    out_bf16 = jax.block_until_ready(
        conv_bn_relu(x, wgt, gamma, beta, compute_dtype=jnp.bfloat16))
    assert out_bf16.shape == (N, Cout, H, W)
    assert jnp.allclose(out_bf16, ref, rtol=1e-1, atol=1e-1), (
        float(jnp.max(jnp.abs(out_bf16 - ref))))

    print("KERNEL_OK")
</pallas_src>

<mosaic_0001>
module attributes {stable_mosaic.version = 11 : i64} {
  func.func @_conv_stats_kernel(%arg0: i32, %arg1: memref<1x16x64xf32, #tpu.memory_space<vmem>>, %arg2: memref<192x128xf32, #tpu.memory_space<vmem>>, %arg3: memref<1x16x128xf32, #tpu.memory_space<vmem>>, %arg4: memref<1x2x128xf32, #tpu.memory_space<vmem>>) attributes {dimension_semantics = [#tpu.dimension_semantics<parallel>], iteration_bounds = array<i64: 2>, scalar_prefetch = 0 : i64, scratch_operands = 0 : i64, tpu.core_type = #tpu.core_type<tc>, window_params = [{transform_indices = @transform_0, window_bounds = array<i64: 1, 16, 64>}, {pipeline_mode = #tpu.pipeline_mode<synchronous>, transform_indices = @transform_1, window_bounds = array<i64: 192, 128>}, {transform_indices = @transform_2, window_bounds = array<i64: 1, 16, 128>}, {transform_indices = @transform_3, window_bounds = array<i64: 1, 2, 128>}]} {
    %c0 = arith.constant 0 : index
    %c0_0 = arith.constant 0 : index
    %c0_1 = arith.constant 0 : index
    %0 = vector.load %arg1[%c0, %c0_0, %c0_1] : memref<1x16x64xf32, #tpu.memory_space<vmem>>, vector<1x16x64xf32>
    %1 = vector.shape_cast %0 : vector<1x16x64xf32> to vector<16x64xf32>
    %cst = arith.constant 0.000000e+00 : f32
    %2 = vector.broadcast %cst : f32 to vector<1x64xf32>
    %3 = vector.extract_strided_slice %1 {offsets = [0, 0], sizes = [15, 64], strides = [1, 1]} : vector<16x64xf32> to vector<15x64xf32>
    %4 = tpu.concatenate %2, %3 in 0 : vector<1x64xf32>, vector<15x64xf32> -> vector<16x64xf32>
    %5 = vector.extract_strided_slice %1 {offsets = [1, 0], sizes = [15, 64], strides = [1, 1]} : vector<16x64xf32> to vector<15x64xf32>
    %6 = tpu.concatenate %5, %2 in 0 : vector<15x64xf32>, vector<1x64xf32> -> vector<16x64xf32>
    %7 = tpu.concatenate %4, %1, %6 in 1 : vector<16x64xf32>, vector<16x64xf32>, vector<16x64xf32> -> vector<16x192xf32>
    %c0_2 = arith.constant 0 : index
    %c0_3 = arith.constant 0 : index
    %8 = vector.load %arg2[%c0_2, %c0_3] : memref<192x128xf32, #tpu.memory_space<vmem>>, vector<192x128xf32>
    %cst_4 = arith.constant dense<0.000000e+00> : vector<16x128xf32>
    %9 = tpu.matmul %7, %8, %cst_4 {dimension_numbers = #tpu.dot_dimension_numbers<[1], [0], [0], [1], [0, 0, 1, 1], [], []>} : vector<16x192xf32>, vector<192x128xf32>, vector<16x128xf32> -> vector<16x128xf32>
    %c0_5 = arith.constant 0 : index
    %c0_6 = arith.constant 0 : index
    %c0_7 = arith.constant 0 : index
    %10 = vector.load %arg3[%c0_5, %c0_6, %c0_7] : memref<1x16x128xf32, #tpu.memory_space<vmem>>, vector<1x16x128xf32>
    %11 = vector.shape_cast %10 : vector<1x16x128xf32> to vector<16x128xf32>
    %12 = vector.shape_cast %9 : vector<16x128xf32> to vector<1x16x128xf32>
    tpu.vector_store %arg3[%c0_5, %c0_6, %c0_7], %12 {strides = array<i32>} : memref<1x16x128xf32, #tpu.memory_space<vmem>>, vector<1x16x128xf32>,
    %cst_8 = arith.constant dense<0.000000e+00> : vector<128xf32>
    %13 = vector.multi_reduction <add>, %9, %cst_8 [0] : vector<16x128xf32> to vector<128xf32>
    %14 = vector.shape_cast %13 : vector<128xf32> to vector<1x128xf32>
    %15 = arith.mulf %9, %9 : vector<16x128xf32>
    %cst_9 = arith.constant dense<0.000000e+00> : vector<128xf32>
    %16 = vector.multi_reduction <add>, %15, %cst_9 [0] : vector<16x128xf32> to vector<128xf32>
    %17 = vector.shape_cast %16 : vector<128xf32> to vector<1x128xf32>
    %18 = tpu.concatenate %14, %17 in 0 : vector<1x128xf32>, vector<1x128xf32> -> vector<2x128xf32>
    %c0_10 = arith.constant 0 : index
    %c0_11 = arith.constant 0 : index
    %c0_12 = arith.constant 0 : index
    %19 = vector.load %arg4[%c0_10, %c0_11, %c0_12] : memref<1x2x128xf32, #tpu.memory_space<vmem>>, vector<1x2x128xf32>
    %20 = vector.shape_cast %19 : vector<1x2x128xf32> to vector<2x128xf32>
    %21 = vector.shape_cast %18 : vector<2x128xf32> to vector<1x2x128xf32>
    tpu.vector_store %arg4[%c0_10, %c0_11, %c0_12], %21 {strides = array<i32>} : memref<1x2x128xf32, #tpu.memory_space<vmem>>, vector<1x2x128xf32>,
    return
  }
  func.func @transform_0(%arg0: i32) -> (i32, i32, i32) {
    %c0_i32 = arith.constant 0 : i32
    %c0_i32_0 = arith.constant 0 : i32
    %c0_i32_1 = arith.constant 0 : i32
    return %arg0, %c0_i32, %c0_i32_0 : i32, i32, i32
  }
  func.func @transform_1(%arg0: i32) -> (i32, i32) {
    %c0_i32 = arith.constant 0 : i32
    %c0_i32_0 = arith.constant 0 : i32
    %c0_i32_1 = arith.constant 0 : i32
    return %c0_i32, %c0_i32_0 : i32, i32
  }
  func.func @transform_2(%arg0: i32) -> (i32, i32, i32) {
    %c0_i32 = arith.constant 0 : i32
    %c0_i32_0 = arith.constant 0 : i32
    %c0_i32_1 = arith.constant 0 : i32
    return %arg0, %c0_i32, %c0_i32_0 : i32, i32, i32
  }
  func.func @transform_3(%arg0: i32) -> (i32, i32, i32) {
    %c0_i32 = arith.constant 0 : i32
    %c0_i32_0 = arith.constant 0 : i32
    %c0_i32_1 = arith.constant 0 : i32
    return %arg0, %c0_i32, %c0_i32_0 : i32, i32, i32
  }
}

module attributes {stable_mosaic.version = 11 : i64} {
  func.func @_bn_relu_kernel(%arg0: i32, %arg1: memref<1x16x128xf32, #tpu.memory_space<vmem>>, %arg2: memref<1x128xf32, #tpu.memory_space<vmem>>, %arg3: memref<1x128xf32, #tpu.memory_space<vmem>>, %arg4: memref<1x16x128xf32, #tpu.memory_space<vmem>>) attributes {dimension_semantics = [#tpu.dimension_semantics<parallel>], iteration_bounds = array<i64: 2>, scalar_prefetch = 0 : i64, scratch_operands = 0 : i64, tpu.core_type = #tpu.core_type<tc>, window_params = [{transform_indices = @transform_0, window_bounds = array<i64: 1, 16, 128>}, {pipeline_mode = #tpu.pipeline_mode<synchronous>, transform_indices = @transform_1, window_bounds = array<i64: 1, 128>}, {pipeline_mode = #tpu.pipeline_mode<synchronous>, transform_indices = @transform_2, window_bounds = array<i64: 1, 128>}, {transform_indices = @transform_3, window_bounds = array<i64: 1, 16, 128>}]} {
    %c0 = arith.constant 0 : index
    %c0_0 = arith.constant 0 : index
    %c0_1 = arith.constant 0 : index
    %0 = vector.load %arg1[%c0, %c0_0, %c0_1] : memref<1x16x128xf32, #tpu.memory_space<vmem>>, vector<1x16x128xf32>
    %1 = vector.shape_cast %0 : vector<1x16x128xf32> to vector<16x128xf32>
    %c0_2 = arith.constant 0 : index
    %c0_3 = arith.constant 0 : index
    %2 = vector.load %arg2[%c0_2, %c0_3] : memref<1x128xf32, #tpu.memory_space<vmem>>, vector<1x128xf32>
    %3 = vector.broadcast %2 : vector<1x128xf32> to vector<16x128xf32>
    %4 = arith.mulf %1, %3 : vector<16x128xf32>
    %c0_4 = arith.constant 0 : index
    %c0_5 = arith.constant 0 : index
    %5 = vector.load %arg3[%c0_4, %c0_5] : memref<1x128xf32, #tpu.memory_space<vmem>>, vector<1x128xf32>
    %6 = vector.broadcast %5 : vector<1x128xf32> to vector<16x128xf32>
    %7 = arith.addf %4, %6 : vector<16x128xf32>
    %cst = arith.constant 0.000000e+00 : f32
    %8 = vector.broadcast %cst : f32 to vector<16x128xf32>
    %9 = arith.maximumf %7, %8 : vector<16x128xf32>
    %c0_6 = arith.constant 0 : index
    %c0_7 = arith.constant 0 : index
    %c0_8 = arith.constant 0 : index
    %10 = vector.load %arg4[%c0_6, %c0_7, %c0_8] : memref<1x16x128xf32, #tpu.memory_space<vmem>>, vector<1x16x128xf32>
    %11 = vector.shape_cast %10 : vector<1x16x128xf32> to vector<16x128xf32>
    %12 = vector.shape_cast %9 : vector<16x128xf32> to vector<1x16x128xf32>
    tpu.vector_store %arg4[%c0_6, %c0_7, %c0_8], %12 {strides = array<i32>} : memref<1x16x128xf32, #tpu.memory_space<vmem>>, vector<1x16x128xf32>,
    return
  }
  func.func @transform_0(%arg0: i32) -> (i32, i32, i32) {
    %c0_i32 = arith.constant 0 : i32
    %c0_i32_0 = arith.constant 0 : i32
    %c0_i32_1 = arith.constant 0 : i32
    return %arg0, %c0_i32, %c0_i32_0 : i32, i32, i32
  }
  func.func @transform_1(%arg0: i32) -> (i32, i32) {
    %c0_i32 = arith.constant 0 : i32
    %c0_i32_0 = arith.constant 0 : i32
    %c0_i32_1 = arith.constant 0 : i32
    return %c0_i32, %c0_i32_0 : i32, i32
  }
  func.func @transform_2(%arg0: i32) -> (i32, i32) {
    %c0_i32 = arith.constant 0 : i32
    %c0_i32_0 = arith.constant 0 : i32
    %c0_i32_1 = arith.constant 0 : i32
    return %c0_i32, %c0_i32_0 : i32, i32
  }
  func.func @transform_3(%arg0: i32) -> (i32, i32, i32) {
    %c0_i32 = arith.constant 0 : i32
    %c0_i32_0 = arith.constant 0 : i32
    %c0_i32_1 = arith.constant 0 : i32
    return %arg0, %c0_i32, %c0_i32_0 : i32, i32, i32
  }
}

</mosaic_0001>

<bundles_post_ra>
// kernel: tile.13
= control target key start
LH: loop header
LB: loop body
LE: loop exit
PB: predicated region body
PF: predicated region fallthrough
CT: control target
= control target key end

     0   :  { %s28_s0 = inlined_call_operand.vmem [shape: f32[8], index: 0, kind: input, shape index: {}]   ;;  %s29_s1 = inlined_call_operand.vmem [shape: f32[16,8], index: 1, kind: output, shape index: {}]  }
   0x1   :  { %v4_v0 = vld [vmem:[%s28_s0] ss:$0 sm:$0xff] }
   0x2   :  { %5 = vst [vmem:[%s29_s1] sm:$0xff] %v4_v0  ;;  %8 = vst [vmem:[%s29_s1 + $0x8] sm:$0xff] %v4_v0 }

// kernel: tile.14
= control target key start
LH: loop header
LB: loop body
LE: loop exit
PB: predicated region body
PF: predicated region fallthrough
CT: control target
= control target key end

     0   :  { %s131_s10 = smov 120   ;;  %s132_s11 = smov 104   ;;  %vm3_vm0 = vcmask 64512   ;;  %vm9_vm1 = vcmask 1048512   ;;  %vm15_vm2 = vcmask 982912   ;;  %vm21_vm3 = vcmask 917312   ;;  %s207_s0 = inlined_call_operand.vmem [shape: f32[16,8], index: 0, kind: input, shape index: {}]   ;;  %s208_s1 = inlined_call_operand.vmem [shape: f32[1,128], index: 1, kind: output, shape index: {}]  }
   0x1   :  { %v101_v0 = vld [vmem:[%s207_s0 + $0xf] sm:$0x1]   ;;  %v103_v1 = vld [vmem:[%s207_s0 + $0xd] sm:$0x1]   ;;  %v102_v2 = vld [vmem:[%s207_s0 + $0xe] sm:$0x1]  }
   0x2   :  { %7 = vrot.lane.b32.xlu0 %v101_v0, %s131_s10  ;;  %19 = vrot.lane.b32.xlu1 %v103_v1, %s132_s11  ;;  %v104_v3 = vld [vmem:[%s207_s0 + $0xc] sm:$0x1]   ;;  %s133_s16 = smov 112   ;;  %s134_s17 = smov 96   ;;  %v105_v4 = vld [vmem:[%s207_s0 + $0xb] sm:$0x1]  }
   0x3   :  { %v106_v5 = vld [vmem:[%s207_s0 + $0xa] sm:$0x1]   ;;  %v2_v6 = vld [vmem:[%s207_s0] sm:$0x1]   ;;  %s135_s24 = smov 88   ;;  %s136_s25 = smov 80  }
   0x4   :  { %4 = vst.msk [vmem:[#allocation0] sm:$0x1] %vm3_vm0, %v2_v6   ;;  %v107_v7 = vld [vmem:[%s207_s0 + $0x9] sm:$0x1]   ;;  %v108_v8 = vld [vmem:[%s207_s0 + $0x8] sm:$0x1]  }
   0x5   :  { %s137_s30 = smov 72   ;;  %s138_s2 = smov 64   ;;  %v109_v9 = vld [vmem:[%s207_s0 + $0x7] sm:$0x1]   ;;  %v110_v10 = vld [vmem:[%s207_s0 + $0x6] sm:$0x1]  }
   0x6   :  { %13 = vrot.lane.b32.xlu0 %v102_v2, %s133_s16  ;;  %25 = vrot.lane.b32.xlu1 %v104_v3, %s134_s17  ;;  %s139_s7 = smov 56   ;;  %s140_s8 = smov 48   ;;  %v111_v11 = vld [vmem:[%s207_s0 + $0x5] sm:$0x1]   ;;  %v112_v12 = vld [vmem:[%s207_s0 + $0x4] sm:$0x1]  }
   0x7   :  { %s141_s13 = smov 40   ;;  %s142_s14 = smov 32   ;;  %v113_v13 = vld [vmem:[%s207_s0 + $0x3] sm:$0x1]   ;;  %v114_v14 = vld [vmem:[%s207_s0 + $0x2] sm:$0x1]  }
   0x8   :  { %s143_s19 = smov 24   ;;  %s144_s20 = smov 16   ;;  %v115_v15 = vld [vmem:[%s207_s0 + $0x1] sm:$0x1]   ;;  %vm27_vm4 = vcmask 851712   ;;  %vm33_vm5 = vcmask 786112  }
   0x9   :  { %s145_s0 = smov 8   ;;  %vm39_vm6 = vcmask 720512   ;;  %vm45_vm7 = vcmask 654912   ;;  %vm51_vm8 = vcmask 589312   ;;  %vm57_vm9 = vcmask 523712  }
   0xa   :  { %31 = vrot.lane.b32.xlu0 %v105_v4, %s135_s24  ;;  %37 = vrot.lane.b32.xlu1 %v106_v5, %s136_s25  ;;  %vm63_vm10 = vcmask 458112   ;;  %vm69_vm11 = vcmask 392512   ;;  %vm75_vm12 = vcmask 326912   ;;  %vm81_vm13 = vcmask 261312  }
   0xb   :  { %vm87_vm14 = vcmask 195712   ;;  %vm93_vm15 = vcmask 130112  }
   0xe   :  { %43 = vrot.lane.b32.xlu0 %v107_v7, %s137_s30  ;;  %49 = vrot.lane.b32.xlu1 %v108_v8, %s138_s2 }
  0x12   :  { %55 = vrot.lane.b32.xlu0 %v109_v9, %s139_s7  ;;  %61 = vrot.lane.b32.xlu1 %v110_v10, %s140_s8 }
  0x16   :  { %67 = vrot.lane.b32.xlu0 %v111_v11, %s141_s13  ;;  %73 = vrot.lane.b32.xlu1 %v112_v12, %s142_s14 }
  0x1a   :  { %79 = vrot.lane.b32.xlu0 %v113_v13, %s143_s19  ;;  %85 = vrot.lane.b32.xlu1 %v114_v14, %s144_s20 }
  0x1e   :  { %91 = vrot.lane.b32.xlu0 %v115_v15, %s145_s0 }
  0x74   :  { %v8_v16 = vpop.permute.xlu0 %7   ;;  %v20_v17 = vpop.permute.xlu1 %19  }
  0x75   :  { %10 = vst.msk [vmem:[#allocation0] sm:$0x1] %vm9_vm1, %v8_v16  }
  0x78   :  { %v14_v18 = vpop.permute.xlu0 %13   ;;  %v26_v19 = vpop.permute.xlu1 %25  }
  0x79   :  { %16 = vst.msk [vmem:[#allocation0] sm:$0x1] %vm15_vm2, %v14_v18  }
  0x7a   :  { %22 = vst.msk [vmem:[#allocation0] sm:$0x1] %vm21_vm3, %v20_v17  }
  0x7b   :  { %28 = vst.msk [vmem:[#allocation0] sm:$0x1] %vm27_vm4, %v26_v19  }
  0x7c   :  { %v32_v20 = vpop.permute.xlu0 %31   ;;  %v38_v21 = vpop.permute.xlu1 %37  }
  0x7d   :  { %34 = vst.msk [vmem:[#allocation0] sm:$0x1] %vm33_vm5, %v32_v20  }
  0x7e   :  { %40 = vst.msk [vmem:[#allocation0] sm:$0x1] %vm39_vm6, %v38_v21  }
  0x80   :  { %v44_v22 = vpop.permute.xlu0 %43   ;;  %v50_v23 = vpop.permute.xlu1 %49  }
  0x81   :  { %46 = vst.msk [vmem:[#allocation0] sm:$0x1] %vm45_vm7, %v44_v22  }
  0x82   :  { %52 = vst.msk [vmem:[#allocation0] sm:$0x1] %vm51_vm8, %v50_v23  }
  0x84   :  { %v56_v24 = vpop.permute.xlu0 %55   ;;  %v62_v25 = vpop.permute.xlu1 %61  }
  0x85   :  { %58 = vst.msk [vmem:[#allocation0] sm:$0x1] %vm57_vm9, %v56_v24  }
  0x86   :  { %64 = vst.msk [vmem:[#allocation0] sm:$0x1] %vm63_vm10, %v62_v25  }
  0x88   :  { %v68_v26 = vpop.permute.xlu0 %67   ;;  %v74_v27 = vpop.permute.xlu1 %73  }
  0x89   :  { %70 = vst.msk [vmem:[#allocation0] sm:$0x1] %vm69_vm11, %v68_v26  }
  0x8a   :  { %76 = vst.msk [vmem:[#allocation0] sm:$0x1] %vm75_vm12, %v74_v27  }
  0x8c   :  { %v80_v28 = vpop.permute.xlu0 %79   ;;  %v86_v29 = vpop.permute.xlu1 %85  }
  0x8d   :  { %82 = vst.msk [vmem:[#allocation0] sm:$0x1] %vm81_vm13, %v80_v28  }
  0x8e   :  { %88 = vst.msk [vmem:[#allocation0] sm:$0x1] %vm87_vm14, %v86_v29  }
  0x90   :  { %v92_v30 = vpop.permute.xlu0 %91  }
  0x91   :  { %94 = vst.msk [vmem:[#allocation0] sm:$0x1] %vm93_vm15, %v92_v30  }
  0x98   :  { %v98_v31 = vld [vmem:[#allocation0] sm:$0x1] }
  0x99   :  { %100 = vst [vmem:[%s208_s1] sm:$0x1] %v98_v31 }

// kernel: _conv_bn_relu_impl.2
= control target key start
LH: loop header
LB: loop body
LE: loop exit
PB: predicated region body
PF: predicated region fallthrough
CT: control target
= control target key end

     0   :  { %s539_s12 = smov 0   ;;  %s684_s0 = inlined_call_operand.vmem [shape: f32[2,16,64], index: 0, kind: input, shape index: {}]   ;;  %s685_s1 = inlined_call_operand.vmem [shape: f32[192,128], index: 1, kind: input, shape index: {}]   ;;  %s686_s2 = inlined_call_operand.vmem [shape: f32[2,16,128], index: 2, kind: output, shape index: {0}]   ;;  %s687_s3 = inlined_call_operand.vmem [shape: f32[2,2,128], index: 3, kind: output, shape index: {1}]  }
   0x1 LB: > { %s418_s13 = sadd.s32 4294967295, %s515_s12   ;;  %p422_p0 = scmp.ge.s32.totalorder %s515_s12, 1  ;;  %s515_s12 = sphi %s539_s12, %s14_s12  }
   0x2   : > { %p140_p1 = scmp.lt.s32.totalorder %s515_s12, 3 }
   0x4   : > { %p141_p2 = pnand %p422_p0, %p140_p1 }
   0x5   : > { %p168_p3 = scmp.lt.s32.totalorder (!%p141_p2), %s418_s13, 1  ;;  %v208_v0 = vld [vmem:[%s685_s1] sm:$0xff] (!%p141_p2)  ;;  %v209_v1 = vld [vmem:[%s685_s1 + $0x8] sm:$0xff] (!%p141_p2)  ;;  %v210_v2 = vld [vmem:[%s685_s1 + $0x10] sm:$0xff] (!%p141_p2)  ;;  %v517_v3 = vmov (!%p141_p2), 0.0|0.0   ;;  %vm193_vm0 = vcmask (!%p141_p2), 1046528  }
   0x6   : > { %144 = sbr.rel (%p141_p2) target bundleno = 367 (0x16f), region = 28  ;;  %434 = vmatprep.subr.bf16.mxu0 (!%p141_p2), %v517_v3  ;;  %470 = vmatprep.subr.bf16.mxu1 (!%p141_p2), %v517_v3  ;;  %v435_v4 = vpack.c.bf16 (!%p141_p2), %v209_v1, %v208_v0  ;;  %v211_v5 = vld [vmem:[%s685_s1 + $0x18] sm:$0xff] (!%p141_p2)  ;;  %v212_v7 = vld [vmem:[%s685_s1 + $0x20] sm:$0xff] (!%p141_p2)  ;;  %v213_v8 = vld [vmem:[%s685_s1 + $0x28] sm:$0xff] (!%p141_p2)  ;;  %vm205_vm1 = vcmask (!%p141_p2), 523264   ;;  %vm186_vm2 = vcmask (!%p141_p2), 1040384  }
   0x7   : > { %v438_v6 = vpack.c.bf16 (!%p141_p2), %v211_v5, %v210_v2  ;;  %v441_v11 = vpack.c.bf16 (!%p141_p2), %v213_v8, %v212_v7  ;;  %v214_v16 = vld [vmem:[%s685_s1 + $0x30] sm:$0xff] (!%p141_p2)  ;;  %v215_v17 = vld [vmem:[%s685_s1 + $0x38] sm:$0xff] (!%p141_p2)  ;;  %s518_s7 = smov (!%p141_p2), 64   ;;  %v216_v23 = vld [vmem:[%s685_s1 + $0x40] sm:$0xff] (!%p141_p2) }
   0x8   : > { %436 = vmatpush1.bf16.msra.mxu0 (!%p141_p2), %v435_v4  ;;  %482 = vmatpush1.bf16.msra.mxu1 (!%p141_p2), %v435_v4  ;;  %v444_v22 = vpack.c.bf16 (!%p141_p2), %v215_v17, %v214_v16  ;;  %v217_v24 = vld [vmem:[%s685_s1 + $0x48] sm:$0xff] (!%p141_p2)  ;;  %v218_v26 = vld [vmem:[%s685_s1 + $0x50] sm:$0xff] (!%p141_p2)  ;;  %v219_v27 = vld [vmem:[%s685_s1 + $0x58] sm:$0xff] (!%p141_p2) }
   0x9   : > { %437 = vmatprep.subr.bf16.mxu0 (!%p141_p2), %v517_v3  ;;  %471 = vmatprep.subr.bf16.mxu1 (!%p141_p2), %v517_v3  ;;  %v447_v25 = vpack.c.bf16 (!%p141_p2), %v217_v24, %v216_v23  ;;  %v450_v28 = vpack.c.bf16 (!%p141_p2), %v219_v27, %v218_v26  ;;  %v220_v29 = vld [vmem:[%s685_s1 + $0x60] sm:$0xff] (!%p141_p2)  ;;  %v221_v30 = vld [vmem:[%s685_s1 + $0x68] sm:$0xff] (!%p141_p2)  ;;  %v222_v32 = vld [vmem:[%s685_s1 + $0x70] sm:$0xff] (!%p141_p2) }
   0xa   : > { %v453_v31 = vpack.c.bf16 (!%p141_p2), %v221_v30, %v220_v29  ;;  %v223_v33 = vld [vmem:[%s685_s1 + $0x78] sm:$0xff] (!%p141_p2)  ;;  %v224_v35 = vld [vmem:[%s685_s1 + $0x80] sm:$0xff] (!%p141_p2)  ;;  %v225_v36 = vld [vmem:[%s685_s1 + $0x88] sm:$0xff] (!%p141_p2) }
   0xb   : > { %v456_v34 = vpack.c.bf16 (!%p141_p2), %v223_v33, %v222_v32  ;;  %v459_v37 = vpack.c.bf16 (!%p141_p2), %v225_v36, %v224_v35  ;;  %v226_v38 = vld [vmem:[%s685_s1 + $0x90] sm:$0xff] (!%p141_p2)  ;;  %v227_v39 = vld [vmem:[%s685_s1 + $0x98] sm:$0xff] (!%p141_p2)  ;;  %v228_v41 = vld [vmem:[%s685_s1 + $0xa0] sm:$0xff] (!%p141_p2) }
   0xc   : > { %439 = vmatpush1.bf16.msra.mxu0 (!%p141_p2), %v438_v6  ;;  %483 = vmatpush1.bf16.msra.mxu1 (!%p141_p2), %v438_v6  ;;  %v462_v40 = vpack.c.bf16 (!%p141_p2), %v227_v39, %v226_v38  ;;  %v229_v42 = vld [vmem:[%s685_s1 + $0xa8] sm:$0xff] (!%p141_p2)  ;;  %v230_v44 = vld [vmem:[%s685_s1 + $0xb0] sm:$0xff] (!%p141_p2)  ;;  %v231_v45 = vld [vmem:[%s685_s1 + $0xb8] sm:$0xff] (!%p141_p2) }
   0xd   : > { %s689_s13 = smov (!%p168_p3, %s418_s13), 1  ;;  %440 = vmatprep.subr.bf16.mxu0 %v517_v3  ;;  %472 = vmatprep.subr.bf16.mxu1 %v517_v3  ;;  %v465_v43 = vpack.c.bf16 %v229_v42, %v228_v41  ;;  %v468_v46 = vpack.c.bf16 %v231_v45, %v230_v44 }
   0xe   : > { %s432_s26 = sshll.u32 %s689_s13, 4 }
   0xf   : > { %s172_s29 = scalar_lea.vmem %s684_s0, %s432_s26  ;;  %s177_s20 = scalar_lea.vmem %s686_s2, %s432_s26 }
  0x10   : > { %v577_v9 = vld [vmem:[%s172_s29] sm:$0xff]  ;;  %v183_v10 = vld [vmem:[%s172_s29 + $0x8] sm:$0xff]  ;;  %442 = vmatpush1.bf16.msra.mxu0 %v441_v11  ;;  %484 = vmatpush1.bf16.msra.mxu1 %v441_v11  ;;  %s427_s26 = sshll.u32 %s689_s13, 1 }
  0x11   : > { %v188_v12 = vrot.slane %v183_v10, 7  ;;  %v504_v13 = vpack.i.bf16 %v183_v10, %v577_v9  ;;  %v194_v14 = vrot.slane %v577_v9, 1  ;;  %v195_v15 = vrot.slane %v183_v10, 1  ;;  %443 = vmatprep.subr.bf16.mxu0 %v517_v3  ;;  %473 = vmatprep.subr.bf16.mxu1 %v517_v3  ;;  %s181_s23 = scalar_lea.vmem %s687_s3, %s427_s26 }
  0x12   : > { %v187_v18 = vrot.slane %v577_v9, 7 }
  0x13   : > { %505 = vrot.lane.b32.xlu0 %v504_v13, %s518_s7  ;;  %v196_v19 = vsel %vm193_vm0, %v194_v14, %v195_v15  ;;  %v198_v20 = vsel %vm193_vm0, %v195_v15, 0.0 }
  0x14   : > { %428 = vmatprep.mubr.msk.f32.mxu0 %vm205_vm1, %v196_v19  ;;  %429 = vmatprep.mubr.msk.f32.mxu1 %vm205_vm1, %v198_v20  ;;  %v597_v21 = vsel %vm186_vm2, %v187_v18, %v188_v12  ;;  %v192_v48 = vsel %vm186_vm2, 0.0, %v187_v18 }
  0x15   : > { %445 = vmatpush1.bf16.msra.mxu0 %v444_v22  ;;  %485 = vmatpush1.bf16.msra.mxu1 %v444_v22 }
  0x16   : > { %446 = vmatprep.subr.bf16.mxu0 %v517_v3  ;;  %474 = vmatprep.subr.bf16.mxu1 %v517_v3 }
  0x19   : > { %448 = vmatpush1.bf16.msra.mxu0 %v447_v25  ;;  %486 = vmatpush1.bf16.msra.mxu1 %v447_v25 }
  0x1a   : > { %449 = vmatprep.subr.bf16.mxu0 %v517_v3  ;;  %475 = vmatprep.subr.bf16.mxu1 %v517_v3 }
  0x1d   : > { %451 = vmatpush1.bf16.msra.mxu0 %v450_v28  ;;  %487 = vmatpush1.bf16.msra.mxu1 %v450_v28 }
  0x1e   : > { %452 = vmatprep.subr.bf16.mxu0 %v517_v3  ;;  %476 = vmatprep.subr.bf16.mxu1 %v517_v3 }
  0x21   : > { %454 = vmatpush1.bf16.msra.mxu0 %v453_v31  ;;  %488 = vmatpush1.bf16.msra.mxu1 %v453_v31 }
  0x22   : > { %455 = vmatprep.subr.bf16.mxu0 %v517_v3  ;;  %477 = vmatprep.subr.bf16.mxu1 %v517_v3 }
  0x25   : > { %457 = vmatpush1.bf16.msra.mxu0 %v456_v34  ;;  %489 = vmatpush1.bf16.msra.mxu1 %v456_v34 }
  0x26   : > { %458 = vmatprep.subr.bf16.mxu0 %v517_v3  ;;  %478 = vmatprep.subr.bf16.mxu1 %v517_v3 }
  0x29   : > { %460 = vmatpush1.bf16.msra.mxu0 %v459_v37  ;;  %490 = vmatpush1.bf16.msra.mxu1 %v459_v37 }
  0x2a   : > { %461 = vmatprep.subr.bf16.mxu0 %v517_v3  ;;  %479 = vmatprep.subr.bf16.mxu1 %v517_v3 }
  0x2d   : > { %463 = vmatpush1.bf16.msra.mxu0 %v462_v40  ;;  %491 = vmatpush1.bf16.msra.mxu1 %v462_v40 }
  0x2e   : > { %464 = vmatprep.subr.bf16.mxu0 %v517_v3  ;;  %480 = vmatprep.subr.bf16.mxu1 %v517_v3 }
  0x31   : > { %466 = vmatpush1.bf16.msra.mxu0 %v465_v43  ;;  %492 = vmatpush1.bf16.msra.mxu1 %v465_v43 }
  0x32   : > { %467 = vmatprep.subr.bf16.mxu0 %v517_v3  ;;  %481 = vmatprep.subr.bf16.mxu1 %v517_v3 }
  0x35   : > { %469 = vmatpush1.bf16.msra.mxu0 %v468_v46  ;;  %493 = vmatpush1.bf16.msra.mxu1 %v468_v46 }
  0x85   : > { %v506_v47 = vpop.permute.xlu0 %505 }
  0x86   : > { %v508_v49 = vunpack.i.h.bf16 %v506_v47  ;;  %v507_v50 = vunpack.i.l.bf16 %v506_v47 }
  0x88   : > { %v206_v51 = vsel %vm205_vm1, %v192_v48, %v507_v50  ;;  %v207_v52 = vsel %vm205_vm1, %v597_v21, %v508_v49 }
  0x89   : > { %302 = vmatmul.mubr.f32.vlgmr.msra.gmra.mrb[0].mxu0 %v206_v51  ;;  %307 = vmatmul.mubr.f32.vlgmr.msra.gmra.mrb[0].mxu1 %v207_v52 }
 0x15c   : > { %v303_v53 = vpop.f32.mrb[0].mxu0  ;;  %v308_v54 = vpop.f32.mrb[0].mxu1 }
 0x15d   : > { %312 = vst [vmem:[%s177_s20] sm:$0xff] %v303_v53  ;;  %v321_v55 = vmul.f32 %v303_v53, %v303_v53  ;;  %313 = vst [vmem:[%s177_s20 + $0x8] sm:$0xff] %v308_v54  ;;  %v314_v56 = vadd.f32 %v308_v54, %v303_v53  ;;  %v322_v57 = vmul.f32 %v308_v54, %v308_v54  ;;  %v305_v58 = vpop.f32.mrb[1].mxu0  ;;  %v310_v59 = vpop.f32.mrb[1].mxu1 }
 0x15f   : > { %v315_v60 = vrot.slane %v314_v56, 4  ;;  %v323_v61 = vadd.f32 %v322_v57, %v321_v55 }
 0x161   : > { %v316_v62 = vadd.f32 %v315_v60, %v314_v56  ;;  %v324_v63 = vrot.slane %v323_v61, 4 }
 0x163   : > { %v317_v0 = vrot.slane %v316_v62, 2  ;;  %v325_v1 = vadd.f32 %v324_v63, %v323_v61 }
 0x165   : > { %v318_v2 = vadd.f32 %v317_v0, %v316_v62  ;;  %v326_v3 = vrot.slane %v325_v1, 2 }
 0x167   : > { %v319_v4 = vrot.slane %v318_v2, 1  ;;  %v327_v5 = vadd.f32 %v326_v3, %v325_v1 }
 0x169   : > { %v328_v6 = vrot.slane %v327_v5, 1  ;;  %v320_v7 = vadd.f32 %v319_v4, %v318_v2 }
 0x16b   : > { %v329_v8 = vadd.f32 %v328_v6, %v327_v5 }
 0x16d   : > { %v330_v9 = vsel %vm186_vm2, %v320_v7, %v329_v8 }
 0x16e   : > { %331 = vst [vmem:[%s181_s23] sm:$0x3] %v330_v9 }
 0x16f PF: > { %s14_s12 = sadd.s32 1, %s515_s12  }
 0x170   : > { %p11_p4 = scmp.ge.s32.totalorder %s14_s12, 4  }
 0x172   :  { %13 = sbr.rel (!%p11_p4) target bundleno = 1 (0x1), region = 70 }

// kernel: _conv_bn_relu_impl.3
= control target key start
LH: loop header
LB: loop body
LE: loop exit
PB: predicated region body
PF: predicated region fallthrough
CT: control target
= control target key end

     0   :  { %s301_s12 = smov 0   ;;  %s318_s0 = inlined_call_operand.vmem [shape: f32[2,16,128], index: 0, kind: input, shape index: {}]   ;;  %s319_s1 = inlined_call_operand.vmem [shape: f32[1,128], index: 1, kind: input, shape index: {}]   ;;  %s320_s2 = inlined_call_operand.vmem [shape: f32[1,128], index: 2, kind: input, shape index: {}]   ;;  %s321_s3 = inlined_call_operand.vmem [shape: f32[2,16,128], index: 3, kind: output, shape index: {}]  }
   0x1 LB: > { %s250_s13 = sadd.s32 4294967295, %s279_s12   ;;  %p254_p0 = scmp.ge.s32.totalorder %s279_s12, 1  ;;  %s279_s12 = sphi %s301_s12, %s13_s12  }
   0x2   : > { %p137_p1 = scmp.lt.s32.totalorder %s279_s12, 3 }
   0x4   : > { %p138_p2 = pnand %p254_p0, %p137_p1 }
   0x5   : > { %p161_p3 = scmp.lt.s32.totalorder (!%p138_p2), %s250_s13, 1  ;;  %v259_v0 = vld [vmem:[%s319_s1] ss:$0 sm:$0xff] (!%p138_p2) }
   0x6   : > { %141 = sbr.rel (%p138_p2) target bundleno = 24 (0x18), region = 32  ;;  %v260_v3 = vld [vmem:[%s320_s2] ss:$0 sm:$0xff] (!%p138_p2) }
   0xd   : > { %s323_s13 = smov (!%p161_p3, %s250_s13), 1 }
   0xe   : > { %s263_s14 = sshll.u32 %s323_s13, 4 }
   0xf   : > { %s165_s19 = scalar_lea.vmem %s318_s0, %s263_s14  ;;  %s170_s24 = scalar_lea.vmem %s321_s3, %s263_s14 }
  0x10   : > { %v171_v1 = vld [vmem:[%s165_s19] sm:$0xff]  ;;  %v172_v2 = vld [vmem:[%s165_s19 + $0x8] sm:$0xff] }
  0x11   : > { %v180_v4 = vmul.f32 %v259_v0, %v171_v1  ;;  %v181_v5 = vmul.f32 %v259_v0, %v172_v2 }
  0x13   : > { %v189_v6 = vadd.f32 %v260_v3, %v180_v4  ;;  %v190_v7 = vadd.f32 %v260_v3, %v181_v5 }
  0x15   : > { %v191_v8 = vmax.f32 %v189_v6, 0.0  ;;  %v192_v9 = vmax.f32 %v190_v7, 0.0 }
  0x17   : > { %193 = vst [vmem:[%s170_s24] sm:$0xff] %v191_v8  ;;  %194 = vst [vmem:[%s170_s24 + $0x8] sm:$0xff] %v192_v9 }
  0x18 PF: > { %s13_s12 = sadd.s32 1, %s279_s12  }
  0x19   : > { %p10_p4 = scmp.ge.s32.totalorder %s13_s12, 4  }
  0x1b   :  { %12 = sbr.rel (!%p10_p4) target bundleno = 1 (0x1), region = 62 }

</bundles_post_ra>
